<compile_context>
chip_gen: v7x
topology: tpu7x:2x2x1
jax: 0.10.0
libtpu: 0.0.40
codegen_flags: <defaults>
</compile_context>

<pallas_src>
import math

import jax
import jax.numpy as jnp
from jax.experimental import pallas as pl
from jax.experimental.pallas import tpu as pltpu


def linear_layer_kernel(p_ref, x_ref, wt_ref, c_ref, o_ref):
    # p_ref : (f_blk, F)      Ps rows for this feature block      (operand dtype)
    # x_ref : (B*C, F)        x as a free reshape; constant index_map -> fetched once
    # wt_ref: (C, tn, f_blk)  Ws[i,o,c] re-laid as [c,o,i] (feature axis on lanes)
    # c_ref : (tn, f_blk)     folded bias (f32): sum_f Ps[i,f]*bs[i,o] + ps[i]
    # o_ref : (B, tn, f_blk)  output block, feature axis on lanes (lane-dense store)
    n_c = wt_ref.shape[0]
    b_dim = o_ref.shape[0]
    f_blk = o_ref.shape[2]

    # Stage 1 (MXU): contract x over the feature axis with this block's Ps rows.
    # (B*C, F) . (f_blk, F) over the last axes -> (B*C, f_blk); the result's lane
    # dim is the feature block (lane-dense), accumulation in f32.
    xp = jax.lax.dot_general(
        x_ref[...], p_ref[...],
        dimension_numbers=(((1,), (1,)), ((), ())),
        preferred_element_type=jnp.float32)               # (B*C, f_blk)
    xp = xp.reshape(b_dim, n_c, f_blk)                    # (B, C, f_blk)

    # Stage 2 (VPU): per-feature Linear(C->O) as an unrolled broadcast-MAC over c.
    # C is small for this module; f_blk tiny (B,C)@(C,O) MXU calls would be pure
    # start/drain latency on v5e/v6e, while the VPU slots have slack here and the
    # accumulation stays in the lane-dense output layout.  All VPU math in f32.
    # TODO(synk): for large C, retile stage 2 onto the MXU (fuse B into a >=128-row
    # M dimension) instead of this unrolled VPU loop.
    wt = wt_ref[...].astype(jnp.float32)                  # (C, tn, f_blk)
    z = xp[:, 0, :][:, None, :] * wt[0][None, :, :]       # (B, tn, f_blk)
    for c in range(1, n_c):
        z = z + xp[:, c, :][:, None, :] * wt[c][None, :, :]

    # Fused epilogue: both PyTorch biases folded into one (tn, f_blk) constant.
    o_ref[...] = (z + c_ref[...][None, :, :]).astype(o_ref.dtype)


def linear_layer_forward(x, Ws, bs, Ps, ps, *, f_blk=None, tn=None,
                         operand_dtype=jnp.bfloat16):
    """x: (B, C, F); Ws: (F, O, C); bs: (F, O); Ps: (F, F); ps: (F,) -> (B, O, F)."""
    B, C, F = x.shape
    O = Ws.shape[1]

    # ---- tile selection -----------------------------------------------------
    if f_blk is None:
        # Prefer a multi-step feature grid (>=4 steps -> pipelining + v7x megacore
        # sharding) with f_blk a multiple of 128 (lane-dense, unmasked stores).
        f_blk = F
        if F % 128 == 0:
            for cand in (512, 256, 128):
                if F % cand == 0 and F // cand >= 4:
                    f_blk = cand
                    break
    if tn is None:
        # Bound the Wt / output blocks for large O (what blows v7x's 64 MiB VMEM).
        tn = O
        if O % 128 == 0 and O >= 1024:
            tn = 512 if O % 512 == 0 else (256 if O % 256 == 0 else 128)

    # (8,128) block-shape guards (last two dims of every block must be divisible
    # by (8,128) or equal the full array dim).
    assert F % f_blk == 0, (F, f_blk)
    assert f_blk == F or f_blk % 128 == 0, ("f_blk must be F or a multiple of 128", f_blk)
    assert O % tn == 0, (O, tn)
    assert tn == O or tn % 8 == 0, ("tn must be O or a multiple of 8", tn)

    n_f, n_o = F // f_blk, O // tn
    multi_step = (n_f * n_o) > 1

    # ---- wrapper-side glue (tiny arrays / free reshapes only) ---------------
    # x: free reshape, no HBM relayout.  bf16 cast halves the MXU-operand bytes
    # (f32 path kept for exact-parity checking).
    x2 = x.reshape(B * C, F).astype(operand_dtype)                  # (B*C, F)
    Ps_lp = Ps.astype(operand_dtype)                                # (F, F)
    # Weight relayout (weights are tiny vs. x): Ws[i,o,c] -> WtT[c,o,i] so the
    # kernel's output is lane-dense on the feature axis.
    WtT = jnp.transpose(Ws, (2, 1, 0)).astype(operand_dtype)        # (C, O, F)
    # Folded bias, computed from f32 Ps and kept f32: constT[o,i].
    constT = (Ps.sum(axis=1, keepdims=True) * bs + ps[:, None]).T   # (O, F)
    constT = constT.astype(jnp.float32)

    # ---- VMEM budget (v7x: 64 MiB physical, 32 MiB scoped default) ----------
    ds = jnp.dtype(operand_dtype).itemsize
    x_bufs = 1 if multi_step else 2
    est_bytes = (
        2 * f_blk * F * ds                # Ps block (double-buffered)
        + x_bufs * B * C * F * ds         # resident x slab
        + 2 * C * tn * f_blk * ds         # WtT block
        + 2 * tn * f_blk * 4              # folded-bias block (f32)
        + 2 * B * tn * f_blk * 4          # output block (f32)
        + (B * C * f_blk + (C + B + 1) * tn * f_blk) * 4  # in-kernel f32 temporaries
    )
    assert est_bytes <= (48 << 20), (
        "tile choice exceeds the 48 MiB v7x VMEM budget; shrink f_blk / tn", est_bytes)
    vmem_limit = int(min(64 << 20, max(32 << 20, 2 * est_bytes)))

    # x's block never changes (constant index_map); single-buffer it when the
    # grid actually pipelines so the resident slab isn't allocated twice.
    x_spec_kwargs = {"pipeline_mode": pl.Buffered(1)} if multi_step else {}
    x_spec = pl.BlockSpec((B * C, F), lambda fj, oj: (0, 0), **x_spec_kwargs)

    out = pl.pallas_call(
        linear_layer_kernel,
        out_shape=jax.ShapeDtypeStruct((B, O, F), x.dtype),
        grid_spec=pltpu.PrefetchScalarGridSpec(
            num_scalar_prefetch=0,
            grid=(n_f, n_o),
            in_specs=[
                pl.BlockSpec((f_blk, F), lambda fj, oj: (fj, 0)),        # Ps rows
                x_spec,                                                  # x slab
                pl.BlockSpec((C, tn, f_blk), lambda fj, oj: (0, oj, fj)),  # W relayout
                pl.BlockSpec((tn, f_blk), lambda fj, oj: (oj, fj)),      # folded bias
            ],
            out_specs=pl.BlockSpec((B, tn, f_blk), lambda fj, oj: (0, oj, fj)),
        ),
        compiler_params=pltpu.CompilerParams(
            # Every grid step writes a distinct output tile (no cross-step
            # accumulator) -> both axes safe to shard across v7x's two TCs.
            dimension_semantics=("parallel", "parallel"),
            vmem_limit_bytes=vmem_limit),
    )(Ps_lp, x2, WtT, constT)

    return out                                                       # (B, O, F)


def ref_forward(x, Ws, bs, Ps, ps):
    """Pure-JAX reference mirroring the PyTorch loop exactly (f32)."""
    y = jnp.einsum('bcf,ioc->ibfo', x, Ws) + bs[:, None, None, :]    # (F, B, F, O)
    z = jnp.einsum('ibfo,if->ibo', y, Ps) + ps[:, None, None]        # (F, B, O)
    return jnp.transpose(z, (1, 2, 0))                               # (B, O, F)


if __name__ == "__main__":
    B, in_channels, out_channels, num_feats = 2, 4, 8, 8

    key = jax.random.PRNGKey(0)
    kx, kw, kb, kp, kpb = jax.random.split(key, 5)

    # Deterministic init mimicking nn.Linear's uniform(-1/sqrt(fan_in), ...).
    bw = 1.0 / math.sqrt(in_channels)
    bp = 1.0 / math.sqrt(num_feats)
    Ws = jax.random.uniform(kw, (num_feats, out_channels, in_channels),
                            minval=-bw, maxval=bw, dtype=jnp.float32)
    bs = jax.random.uniform(kb, (num_feats, out_channels),
                            minval=-bw, maxval=bw, dtype=jnp.float32)
    Ps = jax.random.uniform(kp, (num_feats, num_feats),
                            minval=-bp, maxval=bp, dtype=jnp.float32)
    ps = jax.random.uniform(kpb, (num_feats,),
                            minval=-bp, maxval=bp, dtype=jnp.float32)
    x = jax.random.normal(kx, (B, in_channels, num_feats), dtype=jnp.float32)

    ref = ref_forward(x, Ws, bs, Ps, ps)

    # 1) Exact-parity check with f32 operands (same math as the PyTorch module).
    out_f32 = jax.block_until_ready(
        linear_layer_forward(x, Ws, bs, Ps, ps, operand_dtype=jnp.float32))
    assert out_f32.shape == (B, out_channels, num_feats), out_f32.shape
    assert jnp.allclose(out_f32, ref, atol=1e-4, rtol=1e-4), "f32 mismatch vs reference"

    # 2) Performance configuration: bf16 MXU operands, f32 accumulate/epilogue.
    #    Looser tolerance accounts only for the bf16 rounding of the operands.
    out = jax.block_until_ready(linear_layer_forward(x, Ws, bs, Ps, ps))
    assert out.shape == (B, out_channels, num_feats), out.shape
    assert jnp.allclose(out, ref, atol=5e-2, rtol=5e-2), "bf16 mismatch vs reference"

    print("KERNEL_OK")
</pallas_src>

<mosaic_0001>
module attributes {stable_mosaic.version = 11 : i64} {
  func.func @linear_layer_kernel(%arg0: i32, %arg1: i32, %arg2: memref<8x8xf32, #tpu.memory_space<vmem>>, %arg3: memref<8x8xf32, #tpu.memory_space<vmem>>, %arg4: memref<4x8x8xf32, #tpu.memory_space<vmem>>, %arg5: memref<8x8xf32, #tpu.memory_space<vmem>>, %arg6: memref<2x8x8xf32, #tpu.memory_space<vmem>>) attributes {dimension_semantics = [#tpu.dimension_semantics<parallel>, #tpu.dimension_semantics<parallel>], iteration_bounds = array<i64: 1, 1>, scalar_prefetch = 0 : i64, scratch_operands = 0 : i64, tpu.core_type = #tpu.core_type<tc>, window_params = [{transform_indices = @transform_0, window_bounds = array<i64: 8, 8>}, {pipeline_mode = #tpu.pipeline_mode<synchronous>, transform_indices = @transform_1, window_bounds = array<i64: 8, 8>}, {transform_indices = @transform_2, window_bounds = array<i64: 4, 8, 8>}, {transform_indices = @transform_3, window_bounds = array<i64: 8, 8>}, {transform_indices = @transform_4, window_bounds = array<i64: 2, 8, 8>}]} {
    %c0 = arith.constant 0 : index
    %c0_0 = arith.constant 0 : index
    %0 = vector.load %arg3[%c0, %c0_0] : memref<8x8xf32, #tpu.memory_space<vmem>>, vector<8x8xf32>
    %c0_1 = arith.constant 0 : index
    %c0_2 = arith.constant 0 : index
    %1 = vector.load %arg2[%c0_1, %c0_2] : memref<8x8xf32, #tpu.memory_space<vmem>>, vector<8x8xf32>
    %cst = arith.constant dense<0.000000e+00> : vector<8x8xf32>
    %2 = tpu.matmul %0, %1, %cst {dimension_numbers = #tpu.dot_dimension_numbers<[1], [1], [0], [0], [0, 0, 1, 0], [], []>} : vector<8x8xf32>, vector<8x8xf32>, vector<8x8xf32> -> vector<8x8xf32>
    %3 = vector.shape_cast %2 : vector<8x8xf32> to vector<2x4x8xf32>
    %c0_3 = arith.constant 0 : index
    %c0_4 = arith.constant 0 : index
    %c0_5 = arith.constant 0 : index
    %4 = vector.load %arg4[%c0_3, %c0_4, %c0_5] : memref<4x8x8xf32, #tpu.memory_space<vmem>>, vector<4x8x8xf32>
    %5 = vector.extract_strided_slice %3 {offsets = [0, 0, 0], sizes = [2, 1, 8], strides = [1, 1, 1]} : vector<2x4x8xf32> to vector<2x1x8xf32>
    %6 = vector.shape_cast %5 : vector<2x1x8xf32> to vector<2x8xf32>
    %7 = vector.shape_cast %6 : vector<2x8xf32> to vector<2x1x8xf32>
    %8 = vector.extract_strided_slice %4 {offsets = [0, 0, 0], sizes = [1, 8, 8], strides = [1, 1, 1]} : vector<4x8x8xf32> to vector<1x8x8xf32>
    %9 = vector.shape_cast %8 : vector<1x8x8xf32> to vector<8x8xf32>
    %10 = vector.shape_cast %9 : vector<8x8xf32> to vector<1x8x8xf32>
    %11 = vector.broadcast %7 : vector<2x1x8xf32> to vector<2x8x8xf32>
    %12 = vector.broadcast %10 : vector<1x8x8xf32> to vector<2x8x8xf32>
    %13 = arith.mulf %11, %12 : vector<2x8x8xf32>
    %14 = vector.extract_strided_slice %3 {offsets = [0, 1, 0], sizes = [2, 1, 8], strides = [1, 1, 1]} : vector<2x4x8xf32> to vector<2x1x8xf32>
    %15 = vector.shape_cast %14 : vector<2x1x8xf32> to vector<2x8xf32>
    %16 = vector.shape_cast %15 : vector<2x8xf32> to vector<2x1x8xf32>
    %17 = vector.extract_strided_slice %4 {offsets = [1, 0, 0], sizes = [1, 8, 8], strides = [1, 1, 1]} : vector<4x8x8xf32> to vector<1x8x8xf32>
    %18 = vector.shape_cast %17 : vector<1x8x8xf32> to vector<8x8xf32>
    %19 = vector.shape_cast %18 : vector<8x8xf32> to vector<1x8x8xf32>
    %20 = vector.broadcast %16 : vector<2x1x8xf32> to vector<2x8x8xf32>
    %21 = vector.broadcast %19 : vector<1x8x8xf32> to vector<2x8x8xf32>
    %22 = arith.mulf %20, %21 : vector<2x8x8xf32>
    %23 = arith.addf %13, %22 : vector<2x8x8xf32>
    %24 = vector.extract_strided_slice %3 {offsets = [0, 2, 0], sizes = [2, 1, 8], strides = [1, 1, 1]} : vector<2x4x8xf32> to vector<2x1x8xf32>
    %25 = vector.shape_cast %24 : vector<2x1x8xf32> to vector<2x8xf32>
    %26 = vector.shape_cast %25 : vector<2x8xf32> to vector<2x1x8xf32>
    %27 = vector.extract_strided_slice %4 {offsets = [2, 0, 0], sizes = [1, 8, 8], strides = [1, 1, 1]} : vector<4x8x8xf32> to vector<1x8x8xf32>
    %28 = vector.shape_cast %27 : vector<1x8x8xf32> to vector<8x8xf32>
    %29 = vector.shape_cast %28 : vector<8x8xf32> to vector<1x8x8xf32>
    %30 = vector.broadcast %26 : vector<2x1x8xf32> to vector<2x8x8xf32>
    %31 = vector.broadcast %29 : vector<1x8x8xf32> to vector<2x8x8xf32>
    %32 = arith.mulf %30, %31 : vector<2x8x8xf32>
    %33 = arith.addf %23, %32 : vector<2x8x8xf32>
    %34 = vector.extract_strided_slice %3 {offsets = [0, 3, 0], sizes = [2, 1, 8], strides = [1, 1, 1]} : vector<2x4x8xf32> to vector<2x1x8xf32>
    %35 = vector.shape_cast %34 : vector<2x1x8xf32> to vector<2x8xf32>
    %36 = vector.shape_cast %35 : vector<2x8xf32> to vector<2x1x8xf32>
    %37 = vector.extract_strided_slice %4 {offsets = [3, 0, 0], sizes = [1, 8, 8], strides = [1, 1, 1]} : vector<4x8x8xf32> to vector<1x8x8xf32>
    %38 = vector.shape_cast %37 : vector<1x8x8xf32> to vector<8x8xf32>
    %39 = vector.shape_cast %38 : vector<8x8xf32> to vector<1x8x8xf32>
    %40 = vector.broadcast %36 : vector<2x1x8xf32> to vector<2x8x8xf32>
    %41 = vector.broadcast %39 : vector<1x8x8xf32> to vector<2x8x8xf32>
    %42 = arith.mulf %40, %41 : vector<2x8x8xf32>
    %43 = arith.addf %33, %42 : vector<2x8x8xf32>
    %c0_6 = arith.constant 0 : index
    %c0_7 = arith.constant 0 : index
    %44 = vector.load %arg5[%c0_6, %c0_7] : memref<8x8xf32, #tpu.memory_space<vmem>>, vector<8x8xf32>
    %45 = vector.shape_cast %44 : vector<8x8xf32> to vector<1x8x8xf32>
    %46 = vector.broadcast %45 : vector<1x8x8xf32> to vector<2x8x8xf32>
    %47 = arith.addf %43, %46 : vector<2x8x8xf32>
    %c0_8 = arith.constant 0 : index
    %c0_9 = arith.constant 0 : index
    %c0_10 = arith.constant 0 : index
    %48 = vector.load %arg6[%c0_8, %c0_9, %c0_10] : memref<2x8x8xf32, #tpu.memory_space<vmem>>, vector<2x8x8xf32>
    tpu.vector_store %arg6[%c0_8, %c0_9, %c0_10], %47 {strides = array<i32>} : memref<2x8x8xf32, #tpu.memory_space<vmem>>, vector<2x8x8xf32>,
    return
  }
  func.func @transform_0(%arg0: i32, %arg1: i32) -> (i32, i32) {
    %c0_i32 = arith.constant 0 : i32
    %c0_i32_0 = arith.constant 0 : i32
    return %arg0, %c0_i32 : i32, i32
  }
  func.func @transform_1(%arg0: i32, %arg1: i32) -> (i32, i32) {
    %c0_i32 = arith.constant 0 : i32
    %c0_i32_0 = arith.constant 0 : i32
    %c0_i32_1 = arith.constant 0 : i32
    return %c0_i32, %c0_i32_0 : i32, i32
  }
  func.func @transform_2(%arg0: i32, %arg1: i32) -> (i32, i32, i32) {
    %c0_i32 = arith.constant 0 : i32
    %c0_i32_0 = arith.constant 0 : i32
    return %c0_i32, %arg1, %arg0 : i32, i32, i32
  }
  func.func @transform_3(%arg0: i32, %arg1: i32) -> (i32, i32) {
    %c0_i32 = arith.constant 0 : i32
    return %arg1, %arg0 : i32, i32
  }
  func.func @transform_4(%arg0: i32, %arg1: i32) -> (i32, i32, i32) {
    %c0_i32 = arith.constant 0 : i32
    %c0_i32_0 = arith.constant 0 : i32
    return %c0_i32, %arg1, %arg0 : i32, i32, i32
  }
}

</mosaic_0001>

<bundles_post_ra>
// kernel: tpu_custom_call.1
= control target key start
LH: loop header
LB: loop body
LE: loop exit
PB: predicated region body
PF: predicated region fallthrough
CT: control target
= control target key end

     0   :  { %9 = vsyncpa [#allocation3], 0  ;;  %s415_s0 = inlined_call_operand.hbm [shape: f32[8,8], index: 0, kind: input, shape index: {}]   ;;  %s416_s1 = inlined_call_operand.hbm [shape: f32[8,8], index: 1, kind: input, shape index: {}]   ;;  %s417_s2 = inlined_call_operand.hbm [shape: f32[4,8,8], index: 2, kind: input, shape index: {}]   ;;  %s418_s3 = inlined_call_operand.vmem [shape: f32[8,8], index: 3, kind: input, shape index: {}]   ;;  %s419_s4 = inlined_call_operand.hbm [shape: f32[2,8,8], index: 4, kind: output, shape index: {}]  }
   0x1   :  { %10 = vsyncpa [#allocation6], 0 }
   0x2   :  { %11 = vsyncpa [#allocation4], 0  ;;  %s321_s15 = smov [#allocation5]   ;;  %s322_s17 = smov [#allocation2]  }
   0x3   :  { %s28_s16 = sshll.u32 %s321_s15, 4  ;;  %s18_s18 = sshll.u32 %s322_s17, 4  ;;  %s29_s16 = int_to_ptr.vmem [resolvable:$true] %s28_s16  ;;  %s19_s18 = int_to_ptr.vmem [resolvable:$true] %s18_s18 }
   0x4   :  { %s227_s21 = scalar_lea.hbm %s416_s1, 128 }
   0x5   :  { %p228_p0 = scmp.ne.s32.totalorder %s416_s1, %s227_s21  ;;  %p231_p1 = scmp.lt.u32.totalorder %s227_s21, %s416_s1 }
   0x7   :  { %p233_p2 = pnand %p231_p1, %p228_p0 }
   0x9   :  { %236 = shalt.err (!%p233_p2)
}
   0xa   :  { %s237_s26 = scalar_lea.vmem %s29_s16, 128  ;;  %p242_p4 = scmp.lt.s32.totalorder %s29_s16, %s29_s16 }
   0xb   :  { %p238_p3 = scmp.ne.s32.totalorder %s29_s16, %s237_s26  ;;  %p243_p5 = scmp.lt.s32.totalorder %s237_s26, %s237_s26 }
   0xd   :  { %p244_p6 = por %p243_p5, %p242_p4 }
   0xf   :  { %p245_p7 = pnand %p244_p6, %p238_p3 }
  0x11   :  { %248 = shalt.err (!%p245_p7)
}
  0x12   :  { %31 = dma.hbm_to_vmem [thread:$0]  %s416_s1, 128, %s29_s16, [#allocation6]  }
  0x13   :  { %s249_s5 = scalar_lea.hbm %s415_s0, 128 }
  0x14   :  { %p250_p8 = scmp.ne.s32.totalorder %s415_s0, %s249_s5  ;;  %p253_p9 = scmp.lt.u32.totalorder %s249_s5, %s415_s0 }
  0x16   :  { %p255_p10 = pnand %p253_p9, %p250_p8 }
  0x18   :  { %258 = shalt.err (!%p255_p10)
}
  0x19   :  { %s259_s10 = scalar_lea.vmem %s19_s18, 128  ;;  %p264_p12 = scmp.lt.s32.totalorder %s19_s18, %s19_s18 }
  0x1a   :  { %p260_p11 = scmp.ne.s32.totalorder %s19_s18, %s259_s10  ;;  %p265_p13 = scmp.lt.s32.totalorder %s259_s10, %s259_s10 }
  0x1c   :  { %p266_p0 = por %p265_p13, %p264_p12 }
  0x1e   :  { %p267_p1 = pnand %p266_p0, %p260_p11 }
  0x20   :  { %270 = shalt.err (!%p267_p1)
}
  0x21   :  { %21 = dma.hbm_to_vmem [thread:$0]  %s415_s0, 128, %s19_s18, [#allocation3]  }
  0x22   :  { %s323_s12 = smov [#allocation7]   ;;  %s271_s16 = scalar_lea.hbm %s417_s2, 512 }
  0x23   :  { %s37_s13 = sshll.u32 %s323_s12, 4  ;;  %p272_p2 = scmp.ne.s32.totalorder %s417_s2, %s271_s16  ;;  %s38_s13 = int_to_ptr.vmem [resolvable:$true] %s37_s13 }
  0x24   :  { %p275_p3 = scmp.lt.u32.totalorder %s271_s16, %s417_s2 }
  0x26   :  { %p277_p4 = pnand %p275_p3, %p272_p2 }
  0x28   :  { %280 = shalt.err (!%p277_p4)
}
  0x29   :  { %s281_s22 = scalar_lea.vmem %s38_s13, 512  ;;  %p286_p6 = scmp.lt.s32.totalorder %s38_s13, %s38_s13 }
  0x2a   :  { %p282_p5 = scmp.ne.s32.totalorder %s38_s13, %s281_s22  ;;  %p287_p7 = scmp.lt.s32.totalorder %s281_s22, %s281_s22 }
  0x2c   :  { %p288_p8 = por %p287_p7, %p286_p6 }
  0x2e   :  { %p289_p9 = pnand %p288_p8, %p282_p5 }
  0x30   :  { %292 = shalt.err (!%p289_p9)
}
  0x31   :  { %s324_s0 = smov 128   ;;  %s325_s18 = smov 8  }
  0x32   :  { %43 = dma.hbm_to_vmem [thread:$0]  %s417_s2, 512, %s38_s13, [#allocation6], %s324_s0, %s324_s0, %s325_s18  }
  0x33   :  { %315 = dma.done.wait [#allocation3], 128  }
  0x34   :  { %316 = vsyncadd [#allocation3], 4294967168 }
  0x35   :  { %317 = dma.done.wait [#allocation6], 640  }
  0x36   :  { %318 = vsyncadd [#allocation6], 4294966656  ;;  %v326_v0 = vmov 0.0   ;;  %vm327_vm0 = vmmov 0   ;;  %vm57_vm1 = vcmask 64512   ;;  %v56_v1 = vld [vmem:[#allocation2] sm:$0xff]  ;;  %v141_v3 = vlaneseq }
  0x37   :  { %214 = vmatprep.subr.mxu0 %v326_v0  ;;  %216 = vmatprep.mubr.msk.f32.mxu0 %vm327_vm0, %v326_v0  ;;  %v55_v2 = vld [vmem:[#allocation5] sm:$0xff]  ;;  %v137_v10 = vld [vmem:[#allocation7] sm:$0xff]  ;;  %v138_v11 = vld [vmem:[#allocation7 + $0x8] sm:$0xff]  ;;  %s328_s26 = smov [#allocation8]  }
  0x38   :  { %215 = vmatpush3.xpose.msk.msra.mxu0 %vm57_vm1, %v56_v1  ;;  %v142_v4 = vshrl.u32 %v141_v3, 7  ;;  %v139_v13 = vld [vmem:[#allocation7 + $0x10] sm:$0xff]  ;;  %v140_v23 = vld [vmem:[#allocation7 + $0x18] sm:$0xff]  ;;  %s197_s27 = sshll.u32 %s328_s26, 4  ;;  %s198_s27 = int_to_ptr.vmem [resolvable:$true] %s197_s27 }
  0x39   :  { %v187_v34 = vld [vmem:[%s418_s3] sm:$0xff]  ;;  %s293_s28 = scalar_lea.vmem %s198_s27, 256  ;;  %p298_p11 = scmp.lt.s32.totalorder %s198_s27, %s198_s27 }
  0x3a   :  { %v143_v5 = vsub.s32 0, %v142_v4  ;;  %v153_v6 = vsub.s32 1, %v142_v4  ;;  %v165_v7 = vsub.s32 2, %v142_v4  ;;  %v177_v8 = vsub.s32 3, %v142_v4  ;;  %p294_p10 = scmp.ne.s32.totalorder %s198_s27, %s293_s28  ;;  %p299_p12 = scmp.lt.s32.totalorder %s293_s28, %s293_s28 }
  0x3b   :  { %217 = vmatmul.mubr.msk.f32.vlgmr.msra.gmra.mrb[0].mxu0 %vm57_vm1, %v55_v2 }
  0x3c   :  { %p300_p13 = por %p299_p12, %p298_p11 }
  0x3e   :  { %p301_p0 = pnand %p300_p13, %p294_p10 }
 0x10e   :  { %v130_v9 = vpop.f32.mrb[0].mxu0 }
 0x10f   :  { %v135_v12 = vcombine.high %v130_v9, %v130_v9  ;;  %v144_v14 = vrot.slane %v130_v9, %v143_v5  ;;  %v154_v15 = vrot.slane %v130_v9, %v153_v6  ;;  %v166_v16 = vrot.slane %v130_v9, %v165_v7  ;;  %v218_v17 = vpop.f32.mrb[1].mxu0 }
 0x110   :  { %v178_v18 = vrot.slane %v130_v9, %v177_v8 }
 0x111   :  { %v148_v19 = vrot.slane %v135_v12, %v143_v5  ;;  %v149_v20 = vmul.f32 %v144_v14, %v137_v10  ;;  %v158_v21 = vrot.slane %v135_v12, %v153_v6  ;;  %v159_v22 = vmul.f32 %v154_v15, %v138_v11 }
 0x112   :  { %v170_v24 = vrot.slane %v135_v12, %v165_v7  ;;  %v171_v25 = vmul.f32 %v166_v16, %v139_v13  ;;  %v182_v29 = vrot.slane %v135_v12, %v177_v8  ;;  %v183_v31 = vmul.f32 %v178_v18, %v140_v23 }
 0x113   :  { %v150_v26 = vmul.f32 %v148_v19, %v137_v10  ;;  %v160_v27 = vmul.f32 %v158_v21, %v138_v11  ;;  %v161_v28 = vadd.f32 %v159_v22, %v149_v20 }
 0x114   :  { %v172_v30 = vmul.f32 %v170_v24, %v139_v13  ;;  %v184_v36 = vmul.f32 %v182_v29, %v140_v23 }
 0x115   :  { %v162_v32 = vadd.f32 %v160_v27, %v150_v26  ;;  %v173_v33 = vadd.f32 %v171_v25, %v161_v28 }
 0x117   :  { %v174_v35 = vadd.f32 %v172_v30, %v162_v32  ;;  %v185_v37 = vadd.f32 %v183_v31, %v173_v33 }
 0x119   :  { %v186_v38 = vadd.f32 %v184_v36, %v174_v35  ;;  %v188_v39 = vadd.f32 %v187_v34, %v185_v37 }
 0x11b   :  { %v189_v40 = vadd.f32 %v187_v34, %v186_v38  ;;  %190 = vst.msk [vmem:[#allocation8] sm:$0xff] %vm57_vm1, %v188_v39 }
 0x11d   :  { %191 = vst.msk [vmem:[#allocation8 + $0x8] sm:$0xff] %vm57_vm1, %v189_v40 }
 0x11e   :  { %304 = shalt.err (!%p301_p0)
}
 0x11f   :  { %s305_s30 = scalar_lea.hbm %s419_s4, 256 }
 0x120   :  { %p306_p1 = scmp.ne.s32.totalorder %s419_s4, %s305_s30  ;;  %p309_p2 = scmp.lt.u32.totalorder %s305_s30, %s419_s4 }
 0x122   :  { %p311_p3 = pnand %p309_p2, %p306_p1 }
 0x124   :  { %314 = shalt.err (!%p311_p3)
}
 0x125   :  { %203 = dma.vmem_to_hbm [thread:$0]  %s198_s27, 256, %s419_s4, [#allocation4], %s324_s0, %s324_s0, %s325_s18  }
 0x126   :  { %319 = dma.done.wait [#allocation4], 256  }
 0x127   :  { %320 = vsyncadd [#allocation4], 4294967040 }
 0x128   :  { %207 = vsyncpa [#allocation3], 1 }
 0x129   :  { %208 = vsyncpa [#allocation6], 1 }
 0x12a   :  { %209 = vsyncpa [#allocation4], 1 }

</bundles_post_ra>
